<compile_context>
chip_gen: v6e
topology: v6e:2x2x1
jax: 0.10.0
libtpu: 0.0.40
codegen_flags: <defaults>
</compile_context>

<pallas_src>
import functools
import math

import numpy as np
import jax
import jax.numpy as jnp
from jax.experimental import pallas as pl
from jax.experimental.pallas import tpu as pltpu


def _gelu_new(x):
    c = math.sqrt(2.0 / math.pi)
    return 0.5 * x * (1.0 + jnp.tanh(c * (x + 0.044715 * (x * x * x))))


def _layer_norm(x, gamma, beta, eps):
    mean = jnp.mean(x, axis=-1, keepdims=True)
    var = jnp.mean(jnp.square(x - mean), axis=-1, keepdims=True)
    return (x - mean) * jax.lax.rsqrt(var + eps) * gamma + beta


def albert_layer_kernel(x_ref, q_ref, k_ref, v_ref,
                        wd_ref, bd_ref, g1_ref, b1_ref,
                        wff_ref, bff_ref, wfo_ref, bfo_ref, g2_ref, b2_ref,
                        out_ref,
                        h1_sc, ffo_sc,
                        *, eps):
    f_idx = pl.program_id(2)
    n_f = pl.num_programs(2)

    # ---- attention + residual LayerNorm: once per (batch, seq-tile) ----------
    @pl.when(f_idx == 0)
    def _attention():
        q = q_ref[...]                               # (n_head, TS, att) bf16, pre-scaled
        k = k_ref[...]                               # (n_head, S,  att) bf16
        v = v_ref[...]                               # (n_head, S,  att) bf16

        # batched NT scores over all heads (contract the att dim), f32 accumulation
        sc = jnp.einsum('hqd,hkd->hqk', q, k,
                        preferred_element_type=jnp.float32)      # (n_head, TS, S)
        sc = sc - jnp.max(sc, axis=-1, keepdims=True)
        p = jnp.exp(sc)
        p = p * pl.reciprocal(jnp.sum(p, axis=-1, keepdims=True), approx=True)

        ctx = jnp.einsum('hqk,hkd->hqd', p.astype(jnp.bfloat16), v,
                         preferred_element_type=jnp.float32)     # (n_head, TS, att)

        # output projection: one batched dot against (n_head, att, H), then a cheap
        # leading-axis sum (equivalent to the head-merge + (TS,H)@(H,H) dot, with no
        # relayout of ctx into a head-interleaved slab).
        proj = jnp.einsum('hqd,hdo->hqo', ctx.astype(jnp.bfloat16), wd_ref[...],
                          preferred_element_type=jnp.float32)    # (n_head, TS, H)
        proj = jnp.sum(proj, axis=0) + bd_ref[...]               # (TS, H)

        # residual add + LayerNorm 1 in f32 (x tile is the raw f32 residual)
        h1_sc[...] = _layer_norm(x_ref[...] + proj, g1_ref[...], b1_ref[...], eps)
        ffo_sc[...] = jnp.zeros_like(ffo_sc)

    # ---- FFN over the current F tile, accumulated into VMEM scratch ----------
    h1_bf = h1_sc[...].astype(jnp.bfloat16)
    ff = jnp.dot(h1_bf, wff_ref[...], preferred_element_type=jnp.float32) + bff_ref[...]
    ff = _gelu_new(ff)                                           # f32 (v5e-safe)
    ffo_sc[...] += jnp.dot(ff.astype(jnp.bfloat16), wfo_ref[...],
                           preferred_element_type=jnp.float32)

    # ---- residual + second LayerNorm on the last F tile -----------------------
    @pl.when(f_idx == n_f - 1)
    def _finalize():
        y = ffo_sc[...] + bfo_ref[...] + h1_sc[...]
        out_ref[...] = _layer_norm(y, g2_ref[...], b2_ref[...], eps).astype(out_ref.dtype)


def _pick_tile(total, unit, max_tile):
    """Largest multiple of `unit` that divides `total` and is <= max_tile, else `total`."""
    if total % unit != 0:
        return total
    t = min(max_tile, total)
    t -= t % unit
    while t >= unit:
        if total % t == 0:
            return t
        t -= unit
    return total


def _vmem_limit_bytes():
    try:
        cap = int(pltpu.get_tpu_info().vmem_capacity_bytes)
    except Exception:
        cap = 64 * 1024 * 1024            # conservative (v7x physical VMEM)
    return max(32 * 1024 * 1024, (cap * 3) // 4)


def albert_layer(x, params, *, n_head, att_size, eps,
                 seq_tile=None, ff_tile=None, out_dtype=jnp.float32):
    B, S, H = x.shape
    F = params["wff"].shape[1]
    assert H == n_head * att_size

    # Review: raise seq tile so the re-streamed FF weights see a higher arithmetic
    # intensity (cap 512; override via seq_tile per chip: ~256-384 on v5e).
    TS = seq_tile if seq_tile is not None else _pick_tile(S, 128, 512)
    TF = ff_tile if ff_tile is not None else _pick_tile(F, 256, 1024)
    assert S % TS == 0 and F % TF == 0
    n_s, n_f = S // TS, F // TF

    # ---- precompute Q/K/V outside the kernel (plain XLA GEMMs), head-major ----
    # Folds bias and the 1/sqrt(att) scale; bf16 halves their HBM traffic and makes
    # them direct MXU operands.  (B, S, H) -> (B, n_head, S, att)
    scale = 1.0 / float(np.sqrt(att_size))

    def to_heads(t):
        return t.reshape(B, S, n_head, att_size).transpose(0, 2, 1, 3)

    q = to_heads((x @ params["wq"] + params["bq"]) * scale).astype(jnp.bfloat16)
    k = to_heads(x @ params["wk"] + params["bk"]).astype(jnp.bfloat16)
    v = to_heads(x @ params["wv"] + params["bv"]).astype(jnp.bfloat16)

    # attention output projection weight, pre-split per head: (n_head, att, H)
    wd3 = params["wd"].reshape(n_head, att_size, H).astype(jnp.bfloat16)
    wff = params["wff"].astype(jnp.bfloat16)
    wfo = params["wfo"].astype(jnp.bfloat16)

    def const2(b, s, f):
        return (0, 0)

    in_specs = [
        pl.BlockSpec((None, TS, H), lambda b, s, f: (b, s, 0)),               # x residual tile
        pl.BlockSpec((None, n_head, TS, att_size), lambda b, s, f: (b, 0, s, 0)),  # q (seq-tiled)
        pl.BlockSpec((None, n_head, S, att_size), lambda b, s, f: (b, 0, 0, 0)),   # k (full seq)
        pl.BlockSpec((None, n_head, S, att_size), lambda b, s, f: (b, 0, 0, 0)),   # v (full seq)
        pl.BlockSpec((n_head, att_size, H), lambda b, s, f: (0, 0, 0)),       # dense W (per head)
        pl.BlockSpec((1, H), const2),                                          # dense b
        pl.BlockSpec((1, H), const2), pl.BlockSpec((1, H), const2),            # layer_norm 1
        pl.BlockSpec((H, TF), lambda b, s, f: (0, f)),                         # feedforward W
        pl.BlockSpec((1, TF), lambda b, s, f: (0, f)),                         # feedforward b
        pl.BlockSpec((TF, H), lambda b, s, f: (f, 0)),                         # feedforward_out W
        pl.BlockSpec((1, H), const2),                                          # feedforward_out b
        pl.BlockSpec((1, H), const2), pl.BlockSpec((1, H), const2),            # layer_norm 2
    ]

    kernel = functools.partial(albert_layer_kernel, eps=eps)

    out_itemsize = jnp.dtype(out_dtype).itemsize
    flops = int(B * (4 * S * S * H + 2 * S * H * H + 4 * S * H * F))
    transcendentals = int(B * (n_head * S * S + S * F))
    bytes_accessed = int(
        4 * B * S * H                      # x residual (f32)
        + 6 * B * S * H                    # q, k, v (bf16; k/v fetched once per batch)
        + out_itemsize * B * S * H         # output
        + B * n_s * 2 * 2 * H * F          # wff + wfo re-streamed per (batch, seq-tile)
        + 2 * H * H + 4 * (7 * H + F))     # dense W + biases / LN params

    return pl.pallas_call(
        kernel,
        out_shape=jax.ShapeDtypeStruct((B, S, H), out_dtype),
        grid_spec=pltpu.PrefetchScalarGridSpec(
            num_scalar_prefetch=0,
            grid=(B, n_s, n_f),
            in_specs=in_specs,
            out_specs=pl.BlockSpec((None, TS, H), lambda b, s, f: (b, s, 0)),
            scratch_shapes=[pltpu.VMEM((TS, H), jnp.float32),     # h1 (post-attention)
                            pltpu.VMEM((TS, H), jnp.float32)],    # FFN accumulator
        ),
        compiler_params=pltpu.CompilerParams(
            dimension_semantics=("parallel", "parallel", "arbitrary"),
            vmem_limit_bytes=_vmem_limit_bytes()),
        cost_estimate=pl.CostEstimate(flops=flops,
                                      transcendentals=transcendentals,
                                      bytes_accessed=bytes_accessed),
    )(x, q, k, v,
      wd3, params["bd"], params["g1"], params["b1"],
      wff, params["bff"], wfo, params["bfo"],
      params["g2"], params["b2"])


def albert_layer_ref(x, params, *, n_head, att_size, eps):
    """Pure-JAX f32 reference mirroring the PyTorch forward."""
    q = x @ params["wq"] + params["bq"]
    k = x @ params["wk"] + params["bk"]
    v = x @ params["wv"] + params["bv"]
    B, S, H = x.shape

    def split(t):  # (B,S,H) -> (B, n_head, S, att)
        return t.reshape(B, S, n_head, att_size).transpose(0, 2, 1, 3)

    q, k, v = split(q), split(k), split(v)
    score = jnp.einsum("bhqd,bhkd->bhqk", q, k) / np.sqrt(att_size)
    prob = jax.nn.softmax(score, axis=-1)
    ctx = jnp.einsum("bhqk,bhkd->bhqd", prob, v).transpose(0, 2, 1, 3).reshape(B, S, H)
    proj = ctx @ params["wd"] + params["bd"]
    h1 = _layer_norm(x + proj, params["g1"], params["b1"], eps)
    ff = _gelu_new(h1 @ params["wff"] + params["bff"])
    ffo = ff @ params["wfo"] + params["bfo"]
    return _layer_norm(ffo + h1, params["g2"], params["b2"], eps)


if __name__ == "__main__":
    B, S, H, F = 2, 8, 32, 64          # batch, seq, hidden, hidden_ff
    N_HEAD = 4
    ATT_SIZE = H // N_HEAD             # conf.attention_size
    EPS = 1e-12

    key = jax.random.PRNGKey(0)
    keys = jax.random.split(key, 20)
    scale = 0.05

    def lin(kw, din, dout):
        return scale * jax.random.normal(kw, (din, dout), jnp.float32)

    params = {
        "wq": lin(keys[0], H, H), "bq": scale * jax.random.normal(keys[1], (1, H), jnp.float32),
        "wk": lin(keys[2], H, H), "bk": scale * jax.random.normal(keys[3], (1, H), jnp.float32),
        "wv": lin(keys[4], H, H), "bv": scale * jax.random.normal(keys[5], (1, H), jnp.float32),
        "wd": lin(keys[6], H, H), "bd": scale * jax.random.normal(keys[7], (1, H), jnp.float32),
        "g1": 1.0 + 0.1 * jax.random.normal(keys[13], (1, H), jnp.float32),
        "b1": 0.1 * jax.random.normal(keys[14], (1, H), jnp.float32),
        "wff": lin(keys[8], H, F), "bff": scale * jax.random.normal(keys[9], (1, F), jnp.float32),
        "wfo": lin(keys[10], F, H), "bfo": scale * jax.random.normal(keys[11], (1, H), jnp.float32),
        "g2": 1.0 + 0.1 * jax.random.normal(keys[15], (1, H), jnp.float32),
        "b2": 0.1 * jax.random.normal(keys[16], (1, H), jnp.float32),
    }

    x = jax.random.normal(keys[12], (B, S, H), jnp.float32)

    ref = albert_layer_ref(x, params, n_head=N_HEAD, att_size=ATT_SIZE, eps=EPS)

    out = jax.block_until_ready(
        albert_layer(x, params, n_head=N_HEAD, att_size=ATT_SIZE, eps=EPS))
    assert out.shape == (B, S, H)
    err = float(jnp.max(jnp.abs(out - ref)))
    assert err < 2e-2, f"mismatch vs JAX reference: max abs err {err}"

    print("KERNEL_OK")
</pallas_src>

<mosaic_0001>
module attributes {stable_mosaic.version = 11 : i64} {
  func.func @albert_layer_kernel(%arg0: i32, %arg1: i32, %arg2: i32, %arg3: memref<1x8x32xf32, #tpu.memory_space<vmem>>, %arg4: memref<1x4x8x8xbf16, #tpu.memory_space<vmem>>, %arg5: memref<1x4x8x8xbf16, #tpu.memory_space<vmem>>, %arg6: memref<1x4x8x8xbf16, #tpu.memory_space<vmem>>, %arg7: memref<4x8x32xbf16, #tpu.memory_space<vmem>>, %arg8: memref<1x32xf32, #tpu.memory_space<vmem>>, %arg9: memref<1x32xf32, #tpu.memory_space<vmem>>, %arg10: memref<1x32xf32, #tpu.memory_space<vmem>>, %arg11: memref<32x64xbf16, #tpu.memory_space<vmem>>, %arg12: memref<1x64xf32, #tpu.memory_space<vmem>>, %arg13: memref<64x32xbf16, #tpu.memory_space<vmem>>, %arg14: memref<1x32xf32, #tpu.memory_space<vmem>>, %arg15: memref<1x32xf32, #tpu.memory_space<vmem>>, %arg16: memref<1x32xf32, #tpu.memory_space<vmem>>, %arg17: memref<1x8x32xf32, #tpu.memory_space<vmem>>, %arg18: memref<8x32xf32, #tpu.memory_space<vmem>>, %arg19: memref<8x32xf32, #tpu.memory_space<vmem>>) attributes {dimension_semantics = [#tpu.dimension_semantics<parallel>, #tpu.dimension_semantics<parallel>, #tpu.dimension_semantics<arbitrary>], iteration_bounds = array<i64: 2, 1, 1>, scalar_prefetch = 0 : i64, scratch_operands = 2 : i64, tpu.core_type = #tpu.core_type<tc>, window_params = [{transform_indices = @transform_0, window_bounds = array<i64: 1, 8, 32>}, {transform_indices = @transform_1, window_bounds = array<i64: 1, 4, 8, 8>}, {transform_indices = @transform_2, window_bounds = array<i64: 1, 4, 8, 8>}, {transform_indices = @transform_3, window_bounds = array<i64: 1, 4, 8, 8>}, {pipeline_mode = #tpu.pipeline_mode<synchronous>, transform_indices = @transform_4, window_bounds = array<i64: 4, 8, 32>}, {pipeline_mode = #tpu.pipeline_mode<synchronous>, transform_indices = @transform_5, window_bounds = array<i64: 1, 32>}, {pipeline_mode = #tpu.pipeline_mode<synchronous>, transform_indices = @transform_6, window_bounds = array<i64: 1, 32>}, {pipeline_mode = #tpu.pipeline_mode<synchronous>, transform_indices = @transform_7, window_bounds = array<i64: 1, 32>}, {transform_indices = @transform_8, window_bounds = array<i64: 32, 64>}, {transform_indices = @transform_9, window_bounds = array<i64: 1, 64>}, {transform_indices = @transform_10, window_bounds = array<i64: 64, 32>}, {pipeline_mode = #tpu.pipeline_mode<synchronous>, transform_indices = @transform_11, window_bounds = array<i64: 1, 32>}, {pipeline_mode = #tpu.pipeline_mode<synchronous>, transform_indices = @transform_12, window_bounds = array<i64: 1, 32>}, {pipeline_mode = #tpu.pipeline_mode<synchronous>, transform_indices = @transform_13, window_bounds = array<i64: 1, 32>}, {transform_indices = @transform_14, window_bounds = array<i64: 1, 8, 32>}]} {
    %c0_i32 = arith.constant 0 : i32
    %0 = arith.cmpi eq, %arg2, %c0_i32 : i32
    %1 = arith.extui %0 : i1 to i32
    %c0_i32_0 = arith.constant 0 : i32
    %2 = arith.cmpi ne, %1, %c0_i32_0 : i32
    scf.if %2 {
      %c0_19 = arith.constant 0 : index
      %c0_20 = arith.constant 0 : index
      %c0_21 = arith.constant 0 : index
      %c0_22 = arith.constant 0 : index
      %32 = vector.load %arg4[%c0_19, %c0_20, %c0_21, %c0_22] : memref<1x4x8x8xbf16, #tpu.memory_space<vmem>>, vector<1x4x8x8xbf16>
      %33 = vector.shape_cast %32 : vector<1x4x8x8xbf16> to vector<4x8x8xbf16>
      %c0_23 = arith.constant 0 : index
      %c0_24 = arith.constant 0 : index
      %c0_25 = arith.constant 0 : index
      %c0_26 = arith.constant 0 : index
      %34 = vector.load %arg5[%c0_23, %c0_24, %c0_25, %c0_26] : memref<1x4x8x8xbf16, #tpu.memory_space<vmem>>, vector<1x4x8x8xbf16>
      %35 = vector.shape_cast %34 : vector<1x4x8x8xbf16> to vector<4x8x8xbf16>
      %c0_27 = arith.constant 0 : index
      %c0_28 = arith.constant 0 : index
      %c0_29 = arith.constant 0 : index
      %c0_30 = arith.constant 0 : index
      %36 = vector.load %arg6[%c0_27, %c0_28, %c0_29, %c0_30] : memref<1x4x8x8xbf16, #tpu.memory_space<vmem>>, vector<1x4x8x8xbf16>
      %37 = vector.shape_cast %36 : vector<1x4x8x8xbf16> to vector<4x8x8xbf16>
      "tpu.trace_start"() <{level = 10 : i32, message = "hqd,hkd->hqk"}> : () -> ()
      %cst_31 = arith.constant dense<0.000000e+00> : vector<4x8x8xf32>
      %38 = tpu.matmul %33, %35, %cst_31 {dimension_numbers = #tpu.dot_dimension_numbers<[2], [2], [1], [1], [0, 0, 0, 1, 1, 1], [0], [0]>} : vector<4x8x8xbf16>, vector<4x8x8xbf16>, vector<4x8x8xf32> -> vector<4x8x8xf32>
      "tpu.trace_stop"() : () -> ()
      %cst_32 = arith.constant dense<0xFF800000> : vector<4x8xf32>
      %39 = vector.multi_reduction <maximumf>, %38, %cst_32 [2] : vector<4x8x8xf32> to vector<4x8xf32>
      %40 = vector.shape_cast %39 : vector<4x8xf32> to vector<4x8x1xf32>
      %41 = vector.broadcast %40 : vector<4x8x1xf32> to vector<4x8x8xf32>
      %42 = arith.subf %38, %41 : vector<4x8x8xf32>
      %43 = math.exp %42 : vector<4x8x8xf32>
      %cst_33 = arith.constant dense<0.000000e+00> : vector<4x8xf32>
      %44 = vector.multi_reduction <add>, %43, %cst_33 [2] : vector<4x8x8xf32> to vector<4x8xf32>
      %45 = vector.shape_cast %44 : vector<4x8xf32> to vector<4x8x1xf32>
      %46 = tpu.reciprocal %45 {approx = true} : vector<4x8x1xf32> -> vector<4x8x1xf32>
      %47 = vector.broadcast %46 : vector<4x8x1xf32> to vector<4x8x8xf32>
      %48 = arith.mulf %43, %47 : vector<4x8x8xf32>
      %49 = arith.truncf %48 : vector<4x8x8xf32> to vector<4x8x8xbf16>
      "tpu.trace_start"() <{level = 10 : i32, message = "hqk,hkd->hqd"}> : () -> ()
      %cst_34 = arith.constant dense<0.000000e+00> : vector<4x8x8xf32>
      %50 = tpu.matmul %49, %37, %cst_34 {dimension_numbers = #tpu.dot_dimension_numbers<[2], [1], [1], [2], [0, 0, 0, 1, 1, 2], [0], [0]>} : vector<4x8x8xbf16>, vector<4x8x8xbf16>, vector<4x8x8xf32> -> vector<4x8x8xf32>
      "tpu.trace_stop"() : () -> ()
      %51 = arith.truncf %50 : vector<4x8x8xf32> to vector<4x8x8xbf16>
      %c0_35 = arith.constant 0 : index
      %c0_36 = arith.constant 0 : index
      %c0_37 = arith.constant 0 : index
      %52 = vector.load %arg7[%c0_35, %c0_36, %c0_37] : memref<4x8x32xbf16, #tpu.memory_space<vmem>>, vector<4x8x32xbf16>
      "tpu.trace_start"() <{level = 10 : i32, message = "hqd,hdo->hqo"}> : () -> ()
      %cst_38 = arith.constant dense<0.000000e+00> : vector<4x8x32xf32>
      %53 = tpu.matmul %51, %52, %cst_38 {dimension_numbers = #tpu.dot_dimension_numbers<[2], [1], [1], [2], [0, 0, 0, 1, 1, 2], [0], [0]>} : vector<4x8x8xbf16>, vector<4x8x32xbf16>, vector<4x8x32xf32> -> vector<4x8x32xf32>
      "tpu.trace_stop"() : () -> ()
      %cst_39 = arith.constant dense<0.000000e+00> : vector<8x32xf32>
      %54 = vector.multi_reduction <add>, %53, %cst_39 [0] : vector<4x8x32xf32> to vector<8x32xf32>
      %c0_40 = arith.constant 0 : index
      %c0_41 = arith.constant 0 : index
      %55 = vector.load %arg8[%c0_40, %c0_41] : memref<1x32xf32, #tpu.memory_space<vmem>>, vector<1x32xf32>
      %56 = vector.broadcast %55 : vector<1x32xf32> to vector<8x32xf32>
      %57 = arith.addf %54, %56 : vector<8x32xf32>
      %c0_42 = arith.constant 0 : index
      %c0_43 = arith.constant 0 : index
      %c0_44 = arith.constant 0 : index
      %58 = vector.load %arg3[%c0_42, %c0_43, %c0_44] : memref<1x8x32xf32, #tpu.memory_space<vmem>>, vector<1x8x32xf32>
      %59 = vector.shape_cast %58 : vector<1x8x32xf32> to vector<8x32xf32>
      %60 = arith.addf %59, %57 : vector<8x32xf32>
      %c0_45 = arith.constant 0 : index
      %c0_46 = arith.constant 0 : index
      %61 = vector.load %arg9[%c0_45, %c0_46] : memref<1x32xf32, #tpu.memory_space<vmem>>, vector<1x32xf32>
      %c0_47 = arith.constant 0 : index
      %c0_48 = arith.constant 0 : index
      %62 = vector.load %arg10[%c0_47, %c0_48] : memref<1x32xf32, #tpu.memory_space<vmem>>, vector<1x32xf32>
      %cst_49 = arith.constant dense<0.000000e+00> : vector<8xf32>
      %63 = vector.multi_reduction <add>, %60, %cst_49 [1] : vector<8x32xf32> to vector<8xf32>
      %64 = vector.shape_cast %63 : vector<8xf32> to vector<8x1xf32>
      %cst_50 = arith.constant 3.200000e+01 : f32
      %65 = vector.broadcast %cst_50 : f32 to vector<8x1xf32>
      %66 = arith.divf %64, %65 : vector<8x1xf32>
      %67 = vector.broadcast %66 : vector<8x1xf32> to vector<8x32xf32>
      %68 = arith.subf %60, %67 : vector<8x32xf32>
      %69 = arith.mulf %68, %68 : vector<8x32xf32>
      %cst_51 = arith.constant dense<0.000000e+00> : vector<8xf32>
      %70 = vector.multi_reduction <add>, %69, %cst_51 [1] : vector<8x32xf32> to vector<8xf32>
      %71 = vector.shape_cast %70 : vector<8xf32> to vector<8x1xf32>
      %cst_52 = arith.constant 3.200000e+01 : f32
      %72 = vector.broadcast %cst_52 : f32 to vector<8x1xf32>
      %73 = arith.divf %71, %72 : vector<8x1xf32>
      %74 = vector.broadcast %66 : vector<8x1xf32> to vector<8x32xf32>
      %75 = arith.subf %60, %74 : vector<8x32xf32>
      %cst_53 = arith.constant 9.99999996E-13 : f32
      %76 = vector.broadcast %cst_53 : f32 to vector<8x1xf32>
      %77 = arith.addf %73, %76 : vector<8x1xf32>
      %78 = math.rsqrt %77 : vector<8x1xf32>
      %79 = vector.broadcast %78 : vector<8x1xf32> to vector<8x32xf32>
      %80 = arith.mulf %75, %79 : vector<8x32xf32>
      %81 = vector.broadcast %61 : vector<1x32xf32> to vector<8x32xf32>
      %82 = arith.mulf %80, %81 : vector<8x32xf32>
      %83 = vector.broadcast %62 : vector<1x32xf32> to vector<8x32xf32>
      %84 = arith.addf %82, %83 : vector<8x32xf32>
      %c0_54 = arith.constant 0 : index
      %c0_55 = arith.constant 0 : index
      %85 = vector.load %arg18[%c0_54, %c0_55] : memref<8x32xf32, #tpu.memory_space<vmem>>, vector<8x32xf32>
      tpu.vector_store %arg18[%c0_54, %c0_55], %84 {strides = array<i32>} : memref<8x32xf32, #tpu.memory_space<vmem>>, vector<8x32xf32>,
      %cst_56 = arith.constant 0.000000e+00 : f32
      %86 = vector.broadcast %cst_56 : f32 to vector<8x32xf32>
      %c0_57 = arith.constant 0 : index
      %c0_58 = arith.constant 0 : index
      %87 = vector.load %arg19[%c0_57, %c0_58] : memref<8x32xf32, #tpu.memory_space<vmem>>, vector<8x32xf32>
      tpu.vector_store %arg19[%c0_57, %c0_58], %86 {strides = array<i32>} : memref<8x32xf32, #tpu.memory_space<vmem>>, vector<8x32xf32>,
    } else {
    }
    %c0 = arith.constant 0 : index
    %c0_1 = arith.constant 0 : index
    %3 = vector.load %arg18[%c0, %c0_1] : memref<8x32xf32, #tpu.memory_space<vmem>>, vector<8x32xf32>
    %4 = arith.truncf %3 : vector<8x32xf32> to vector<8x32xbf16>
    %c0_2 = arith.constant 0 : index
    %c0_3 = arith.constant 0 : index
    %5 = vector.load %arg11[%c0_2, %c0_3] : memref<32x64xbf16, #tpu.memory_space<vmem>>, vector<32x64xbf16>
    %cst = arith.constant dense<0.000000e+00> : vector<8x64xf32>
    %6 = tpu.matmul %4, %5, %cst {dimension_numbers = #tpu.dot_dimension_numbers<[1], [0], [0], [1], [0, 0, 1, 1], [], []>} : vector<8x32xbf16>, vector<32x64xbf16>, vector<8x64xf32> -> vector<8x64xf32>
    %c0_4 = arith.constant 0 : index
    %c0_5 = arith.constant 0 : index
    %7 = vector.load %arg12[%c0_4, %c0_5] : memref<1x64xf32, #tpu.memory_space<vmem>>, vector<1x64xf32>
    %8 = vector.broadcast %7 : vector<1x64xf32> to vector<8x64xf32>
    %9 = arith.addf %6, %8 : vector<8x64xf32>
    %cst_6 = arith.constant 5.000000e-01 : f32
    %10 = vector.broadcast %cst_6 : f32 to vector<8x64xf32>
    %11 = arith.mulf %10, %9 : vector<8x64xf32>
    %12 = arith.mulf %9, %9 : vector<8x64xf32>
    %13 = arith.mulf %12, %9 : vector<8x64xf32>
    %cst_7 = arith.constant 4.471500e-02 : f32
    %14 = vector.broadcast %cst_7 : f32 to vector<8x64xf32>
    %15 = arith.mulf %14, %13 : vector<8x64xf32>
    %16 = arith.addf %9, %15 : vector<8x64xf32>
    %cst_8 = arith.constant 0.797884583 : f32
    %17 = vector.broadcast %cst_8 : f32 to vector<8x64xf32>
    %18 = arith.mulf %17, %16 : vector<8x64xf32>
    %19 = math.tanh %18 : vector<8x64xf32>
    %cst_9 = arith.constant 1.000000e+00 : f32
    %20 = vector.broadcast %cst_9 : f32 to vector<8x64xf32>
    %21 = arith.addf %20, %19 : vector<8x64xf32>
    %22 = arith.mulf %11, %21 : vector<8x64xf32>
    %c0_10 = arith.constant 0 : index
    %c0_11 = arith.constant 0 : index
    %23 = vector.load %arg19[%c0_10, %c0_11] : memref<8x32xf32, #tpu.memory_space<vmem>>, vector<8x32xf32>
    %24 = arith.truncf %22 : vector<8x64xf32> to vector<8x64xbf16>
    %c0_12 = arith.constant 0 : index
    %c0_13 = arith.constant 0 : index
    %25 = vector.load %arg13[%c0_12, %c0_13] : memref<64x32xbf16, #tpu.memory_space<vmem>>, vector<64x32xbf16>
    %cst_14 = arith.constant dense<0.000000e+00> : vector<8x32xf32>
    %26 = tpu.matmul %24, %25, %cst_14 {dimension_numbers = #tpu.dot_dimension_numbers<[1], [0], [0], [1], [0, 0, 1, 1], [], []>} : vector<8x64xbf16>, vector<64x32xbf16>, vector<8x32xf32> -> vector<8x32xf32>
    %27 = arith.addf %23, %26 : vector<8x32xf32>
    %c0_15 = arith.constant 0 : index
    %c0_16 = arith.constant 0 : index
    %28 = vector.load %arg19[%c0_15, %c0_16] : memref<8x32xf32, #tpu.memory_space<vmem>>, vector<8x32xf32>
    tpu.vector_store %arg19[%c0_15, %c0_16], %27 {strides = array<i32>} : memref<8x32xf32, #tpu.memory_space<vmem>>, vector<8x32xf32>,
    %c0_i32_17 = arith.constant 0 : i32
    %29 = arith.cmpi eq, %arg2, %c0_i32_17 : i32
    %30 = arith.extui %29 : i1 to i32
    %c0_i32_18 = arith.constant 0 : i32
    %31 = arith.cmpi ne, %30, %c0_i32_18 : i32
    scf.if %31 {
      %c0_19 = arith.constant 0 : index
      %c0_20 = arith.constant 0 : index
      %32 = vector.load %arg19[%c0_19, %c0_20] : memref<8x32xf32, #tpu.memory_space<vmem>>, vector<8x32xf32>
      %c0_21 = arith.constant 0 : index
      %c0_22 = arith.constant 0 : index
      %33 = vector.load %arg14[%c0_21, %c0_22] : memref<1x32xf32, #tpu.memory_space<vmem>>, vector<1x32xf32>
      %34 = vector.broadcast %33 : vector<1x32xf32> to vector<8x32xf32>
      %35 = arith.addf %32, %34 : vector<8x32xf32>
      %c0_23 = arith.constant 0 : index
      %c0_24 = arith.constant 0 : index
      %36 = vector.load %arg18[%c0_23, %c0_24] : memref<8x32xf32, #tpu.memory_space<vmem>>, vector<8x32xf32>
      %37 = arith.addf %35, %36 : vector<8x32xf32>
      %c0_25 = arith.constant 0 : index
      %c0_26 = arith.constant 0 : index
      %38 = vector.load %arg15[%c0_25, %c0_26] : memref<1x32xf32, #tpu.memory_space<vmem>>, vector<1x32xf32>
      %c0_27 = arith.constant 0 : index
      %c0_28 = arith.constant 0 : index
      %39 = vector.load %arg16[%c0_27, %c0_28] : memref<1x32xf32, #tpu.memory_space<vmem>>, vector<1x32xf32>
      %cst_29 = arith.constant dense<0.000000e+00> : vector<8xf32>
      %40 = vector.multi_reduction <add>, %37, %cst_29 [1] : vector<8x32xf32> to vector<8xf32>
      %41 = vector.shape_cast %40 : vector<8xf32> to vector<8x1xf32>
      %cst_30 = arith.constant 3.200000e+01 : f32
      %42 = vector.broadcast %cst_30 : f32 to vector<8x1xf32>
      %43 = arith.divf %41, %42 : vector<8x1xf32>
      %44 = vector.broadcast %43 : vector<8x1xf32> to vector<8x32xf32>
      %45 = arith.subf %37, %44 : vector<8x32xf32>
      %46 = arith.mulf %45, %45 : vector<8x32xf32>
      %cst_31 = arith.constant dense<0.000000e+00> : vector<8xf32>
      %47 = vector.multi_reduction <add>, %46, %cst_31 [1] : vector<8x32xf32> to vector<8xf32>
      %48 = vector.shape_cast %47 : vector<8xf32> to vector<8x1xf32>
      %cst_32 = arith.constant 3.200000e+01 : f32
      %49 = vector.broadcast %cst_32 : f32 to vector<8x1xf32>
      %50 = arith.divf %48, %49 : vector<8x1xf32>
      %51 = vector.broadcast %43 : vector<8x1xf32> to vector<8x32xf32>
      %52 = arith.subf %37, %51 : vector<8x32xf32>
      %cst_33 = arith.constant 9.99999996E-13 : f32
      %53 = vector.broadcast %cst_33 : f32 to vector<8x1xf32>
      %54 = arith.addf %50, %53 : vector<8x1xf32>
      %55 = math.rsqrt %54 : vector<8x1xf32>
      %56 = vector.broadcast %55 : vector<8x1xf32> to vector<8x32xf32>
      %57 = arith.mulf %52, %56 : vector<8x32xf32>
      %58 = vector.broadcast %38 : vector<1x32xf32> to vector<8x32xf32>
      %59 = arith.mulf %57, %58 : vector<8x32xf32>
      %60 = vector.broadcast %39 : vector<1x32xf32> to vector<8x32xf32>
      %61 = arith.addf %59, %60 : vector<8x32xf32>
      %c0_34 = arith.constant 0 : index
      %c0_35 = arith.constant 0 : index
      %c0_36 = arith.constant 0 : index
      %62 = vector.load %arg17[%c0_34, %c0_35, %c0_36] : memref<1x8x32xf32, #tpu.memory_space<vmem>>, vector<1x8x32xf32>
      %63 = vector.shape_cast %62 : vector<1x8x32xf32> to vector<8x32xf32>
      %64 = vector.shape_cast %61 : vector<8x32xf32> to vector<1x8x32xf32>
      tpu.vector_store %arg17[%c0_34, %c0_35, %c0_36], %64 {strides = array<i32>} : memref<1x8x32xf32, #tpu.memory_space<vmem>>, vector<1x8x32xf32>,
    } else {
    }
    return
  }
  func.func @transform_0(%arg0: i32, %arg1: i32, %arg2: i32) -> (i32, i32, i32) {
    %c0_i32 = arith.constant 0 : i32
    %c0_i32_0 = arith.constant 0 : i32
    return %arg0, %arg1, %c0_i32 : i32, i32, i32
  }
  func.func @transform_1(%arg0: i32, %arg1: i32, %arg2: i32) -> (i32, i32, i32, i32) {
    %c0_i32 = arith.constant 0 : i32
    %c0_i32_0 = arith.constant 0 : i32
    %c0_i32_1 = arith.constant 0 : i32
    return %arg0, %c0_i32, %arg1, %c0_i32_0 : i32, i32, i32, i32
  }
  func.func @transform_2(%arg0: i32, %arg1: i32, %arg2: i32) -> (i32, i32, i32, i32) {
    %c0_i32 = arith.constant 0 : i32
    %c0_i32_0 = arith.constant 0 : i32
    %c0_i32_1 = arith.constant 0 : i32
    %c0_i32_2 = arith.constant 0 : i32
    return %arg0, %c0_i32, %c0_i32_0, %c0_i32_1 : i32, i32, i32, i32
  }
  func.func @transform_3(%arg0: i32, %arg1: i32, %arg2: i32) -> (i32, i32, i32, i32) {
    %c0_i32 = arith.constant 0 : i32
    %c0_i32_0 = arith.constant 0 : i32
    %c0_i32_1 = arith.constant 0 : i32
    %c0_i32_2 = arith.constant 0 : i32
    return %arg0, %c0_i32, %c0_i32_0, %c0_i32_1 : i32, i32, i32, i32
  }
  func.func @transform_4(%arg0: i32, %arg1: i32, %arg2: i32) -> (i32, i32, i32) {
    %c0_i32 = arith.constant 0 : i32
    %c0_i32_0 = arith.constant 0 : i32
    %c0_i32_1 = arith.constant 0 : i32
    %c0_i32_2 = arith.constant 0 : i32
    return %c0_i32, %c0_i32_0, %c0_i32_1 : i32, i32, i32
  }
  func.func @transform_5(%arg0: i32, %arg1: i32, %arg2: i32) -> (i32, i32) {
    %c0_i32 = arith.constant 0 : i32
    %c0_i32_0 = arith.constant 0 : i32
    %c0_i32_1 = arith.constant 0 : i32
    return %c0_i32, %c0_i32_0 : i32, i32
  }
  func.func @transform_6(%arg0: i32, %arg1: i32, %arg2: i32) -> (i32, i32) {
    %c0_i32 = arith.constant 0 : i32
    %c0_i32_0 = arith.constant 0 : i32
    %c0_i32_1 = arith.constant 0 : i32
    return %c0_i32, %c0_i32_0 : i32, i32
  }
  func.func @transform_7(%arg0: i32, %arg1: i32, %arg2: i32) -> (i32, i32) {
    %c0_i32 = arith.constant 0 : i32
    %c0_i32_0 = arith.constant 0 : i32
    %c0_i32_1 = arith.constant 0 : i32
    return %c0_i32, %c0_i32_0 : i32, i32
  }
  func.func @transform_8(%arg0: i32, %arg1: i32, %arg2: i32) -> (i32, i32) {
    %c0_i32 = arith.constant 0 : i32
    %c0_i32_0 = arith.constant 0 : i32
    return %c0_i32, %arg2 : i32, i32
  }
  func.func @transform_9(%arg0: i32, %arg1: i32, %arg2: i32) -> (i32, i32) {
    %c0_i32 = arith.constant 0 : i32
    %c0_i32_0 = arith.constant 0 : i32
    return %c0_i32, %arg2 : i32, i32
  }
  func.func @transform_10(%arg0: i32, %arg1: i32, %arg2: i32) -> (i32, i32) {
    %c0_i32 = arith.constant 0 : i32
    %c0_i32_0 = arith.constant 0 : i32
    return %arg2, %c0_i32 : i32, i32
  }
  func.func @transform_11(%arg0: i32, %arg1: i32, %arg2: i32) -> (i32, i32) {
    %c0_i32 = arith.constant 0 : i32
    %c0_i32_0 = arith.constant 0 : i32
    %c0_i32_1 = arith.constant 0 : i32
    return %c0_i32, %c0_i32_0 : i32, i32
  }
  func.func @transform_12(%arg0: i32, %arg1: i32, %arg2: i32) -> (i32, i32) {
    %c0_i32 = arith.constant 0 : i32
    %c0_i32_0 = arith.constant 0 : i32
    %c0_i32_1 = arith.constant 0 : i32
    return %c0_i32, %c0_i32_0 : i32, i32
  }
  func.func @transform_13(%arg0: i32, %arg1: i32, %arg2: i32) -> (i32, i32) {
    %c0_i32 = arith.constant 0 : i32
    %c0_i32_0 = arith.constant 0 : i32
    %c0_i32_1 = arith.constant 0 : i32
    return %c0_i32, %c0_i32_0 : i32, i32
  }
  func.func @transform_14(%arg0: i32, %arg1: i32, %arg2: i32) -> (i32, i32, i32) {
    %c0_i32 = arith.constant 0 : i32
    %c0_i32_0 = arith.constant 0 : i32
    return %arg0, %arg1, %c0_i32 : i32, i32, i32
  }
}

</mosaic_0001>

<bundles_post_ra>
// kernel: tpu_custom_call.1
= control target key start
LH: loop header
LB: loop body
LE: loop exit
PB: predicated region body
PF: predicated region fallthrough
CT: control target
= control target key end

     0   :  { %s2828_s0 = inlined_call_operand.vmem [shape: f32[2,8,32], index: 0, kind: input, shape index: {}]   ;;  %s2829_s1 = inlined_call_operand.vmem [shape: bf16[2,4,8,8], index: 1, kind: input, shape index: {}]   ;;  %s2830_s2 = inlined_call_operand.hbm [shape: bf16[2,4,8,8], index: 2, kind: input, shape index: {}]   ;;  %s2831_s3 = inlined_call_operand.hbm [shape: bf16[2,4,8,8], index: 3, kind: input, shape index: {}]   ;;  %s2832_s4 = inlined_call_operand.hbm [shape: bf16[4,8,32], index: 4, kind: input, shape index: {}]   ;;  %s2833_s5 = inlined_call_operand.vmem [shape: f32[1,32], index: 5, kind: input, shape index: {}]   ;;  %s2834_s6 = inlined_call_operand.vmem [shape: f32[1,32], index: 6, kind: input, shape index: {}]   ;;  %s2835_s7 = inlined_call_operand.hbm [shape: f32[1,32], index: 7, kind: input, shape index: {}]   ;;  %s2836_s8 = inlined_call_operand.hbm [shape: bf16[32,64], index: 8, kind: input, shape index: {}]   ;;  %s2837_s9 = inlined_call_operand.hbm [shape: f32[1,64], index: 9, kind: input, shape index: {}]   ;;  %s2838_s10 = inlined_call_operand.vmem [shape: bf16[64,32], index: 10, kind: input, shape index: {}]   ;;  %s2839_s11 = inlined_call_operand.vmem [shape: f32[1,32], index: 11, kind: input, shape index: {}]   ;;  %s2840_s12 = inlined_call_operand.vmem [shape: f32[1,32], index: 12, kind: input, shape index: {}]   ;;  %s2841_s13 = inlined_call_operand.vmem [shape: f32[1,32], index: 13, kind: input, shape index: {}]   ;;  %s2842_s14 = inlined_call_operand.hbm [shape: f32[2,8,32], index: 14, kind: output, shape index: {}]  }
   0x1   :  { %2853 = sst [smem:[#allocation25_spill]] %s2830_s2 }
   0x2   :  { %2854 = sst [smem:[#allocation26_spill]] %s2831_s3 }
   0x3   :  { %2855 = sst [smem:[#allocation27_spill]] %s2832_s4 }
   0x4   :  { %2856 = sst [smem:[#allocation28_spill]] %s2835_s7 }
   0x5   :  { %2857 = sst [smem:[#allocation29_spill]] %s2836_s8 }
   0x6   :  { %2858 = sst [smem:[#allocation30_spill]] %s2837_s9 }
   0x7   :  { %2859 = sst [smem:[#allocation31_spill]] %s2839_s11 }
   0x8   :  { %2860 = sst [smem:[#allocation32_spill]] %s2840_s12 }
   0x9   :  { %2861 = sst [smem:[#allocation33_spill]] %s2841_s13 }
   0xa   :  { %2862 = sst [smem:[#allocation34_spill]] %s2842_s14 }
   0xb   :  { %19 = vsyncpa [#allocation5], 0 }
   0xc   :  { %21 = vsyncpa [#allocation5 + $0x1], 0 }
   0xd   :  { %22 = vsyncpa [#allocation8], 0 }
   0xe   :  { %24 = vsyncpa [#allocation8 + $0x1], 0 }
   0xf   :  { %25 = vsyncpa [#allocation11], 0 }
  0x10   :  { %26 = vsyncpa [#allocation14], 0 }
  0x11   :  { %27 = vsyncpa [#allocation6], 0 }
  0x12   :  { %29 = vsyncpa [#allocation6 + $0x1], 0  ;;  %s2454_s29 = smov 0   ;;  %s2456_s30 = smov 0  }
  0x13   :  { %s2458_s15 = smov 0   ;;  %s2460_s16 = smov 0  }
  0x14   :  { %s2462_s17 = smov 0   ;;  %s2464_s18 = smov 0  }
  0x15 LB: > { %2863 = sst [smem:[#allocation22_spill]] %s2346_s29  ;;  %s2485_s19 = sadd.s32 4294967295, %s2366_s18   ;;  %s2366_s18 = sphi %s2464_s18, %s35_s18   ;;  %s2362_s17 = sphi %s2462_s17, %s2901_s17   ;;  %s2358_s16 = sphi %s2460_s16, %s2900_s16   ;;  %s2354_s15 = sphi %s2458_s15, %s2899_s15   ;;  %s2350_s30 = sphi %s2456_s30, %s2898_s30   ;;  %s2346_s29 = sphi %s2454_s29, %s2897_s29  }
  0x16   : > { %s1787_s20 = sadd.s32 4294967294, %s2366_s18   ;;  %p130_p0 = scmp.ne.s32.totalorder %s2350_s30, %s2346_s29 }
  0x17   : > { %p2846_p1 = scmp.eq.s32.totalorder %s2485_s19, 0  ;;  %p413_p3 = scmp.eq.s32.totalorder %s1787_s20, 1 }
  0x18   : > { %p1788_p5 = scmp.ge.s32.totalorder %s2366_s18, 1  ;;  %p420_p7 = scmp.lt.s32.totalorder %s2366_s18, 3 }
  0x19   : > { %p2494_p4 = por %p2846_p1, %p130_p0  ;;  %p2499_p6 = por %p413_p3, %p130_p0 }
  0x1a   : > { %p2504_p8 = pnand %p1788_p5, %p420_p7  ;;  %s2368_s24 = smov [#allocation9]  }
  0x1b   : > { %s2864_s21 = scalar_select %p2494_p4, 1, 0 }
  0x1c   : > { %s2865_s22 = scalar_select %p2499_p6, 1, 0 }
  0x1d   : > { %s432_s25 = sshll.u32 %s2368_s24, 4  ;;  %p1992_p9 = pneg %p2504_p8  ;;  %s433_s25 = int_to_ptr.vmem [resolvable:$true] %s432_s25 }
  0x1e   : > { %2866 = sst [smem:[#allocation23_spill]] %s2865_s22  ;;  %s2369_s27 = smov [#allocation10]  }
  0x1f   : > { %p2513_p11 = pnand %p1992_p9, %p2846_p1  ;;  %s452_s28 = sshll.u32 %s2369_s27, 4  ;;  %s453_s28 = int_to_ptr.vmem [resolvable:$true] %s452_s28 }
  0x20   : > { %s2370_s20 = smov [#allocation12]   ;;  %s2121_s29 = scalar_lea.vmem %s433_s25, 256 }
  0x21   : > { %s464_s22 = sshll.u32 %s2370_s20, 4  ;;  %p2112_p12 = pneg %p2513_p11  ;;  %s465_s22 = int_to_ptr.vmem [resolvable:$true] %s464_s22 }
  0x22   : > { %p2122_p13 = scmp.ne.s32.totalorder %s433_s25, %s2121_s29  ;;  %p2129_p5 = scmp.lt.s32.totalorder %s433_s25, %s433_s25 }
  0x23   : > { %p2130_p7 = scmp.lt.s32.totalorder %s2121_s29, %s2121_s29 }
  0x24   : > { %p2124_p0 = pnand %p2122_p13, %p2112_p12 }
  0x25   : > { %p2131_p9 = por %p2130_p7, %p2129_p5 }
  0x26   : > { %p2125_p3 = pneg %p2124_p0 }
  0x28   : > { %p2132_p10 = pnand %p2131_p9, %p2125_p3 }
  0x2a   : > { %2135 = shalt.err (!%p2132_p10)
}
  0x2b   : > { %s2848_s24 = smov 64   ;;  %s2850_s27 = smov 4  }
  0x2c   : > { %s2869_s4 = sld [smem:[#allocation27_spill]]  ;;  %s2147_s13 = scalar_lea.vmem %s453_s28, 16 }
  0x2d   : > { %p2148_p13 = scmp.ne.s32.totalorder %s453_s28, %s2147_s13  ;;  %s2154_s29 = scalar_lea.vmem %s453_s28, 32 }
  0x2e   : > { %p2155_p10 = scmp.lt.s32.totalorder %s453_s28, %s453_s28  ;;  %p2156_p3 = scmp.lt.s32.totalorder %s2154_s29, %s2147_s13 }
  0x2f   : > { %p2150_p0 = pnand %p2148_p13, %p2112_p12 }
  0x30   : > { %p2157_p7 = por %p2156_p3, %p2155_p10 }
  0x31   : > { %p2151_p5 = pneg %p2150_p0 }
  0x32   : > { %1995 = dma.hbm_to_vmem [thread:$0]  (!%p2513_p11), %s2869_s4, 256, %s433_s25, [#allocation8], %s2848_s24, %s2848_s24, %s2850_s27  }
  0x33   : > { %p2158_p9 = pnand %p2157_p7, %p2151_p5 }
  0x35   : > { %2161 = shalt.err (!%p2158_p9)
}
  0x36   : > { %s2870_s7 = sld [smem:[#allocation28_spill]]  ;;  %s2173_s14 = scalar_lea.vmem %s465_s22, 256 }
  0x37   : > { %p2174_p1 = scmp.ne.s32.totalorder %s465_s22, %s2173_s14  ;;  %p2181_p2 = scmp.lt.s32.totalorder %s465_s22, %s465_s22 }
  0x38   : > { %p2182_p6 = scmp.lt.s32.totalorder %s2173_s14, %s2173_s14 }
  0x39   : > { %p2176_p13 = pnand %p2174_p1, %p2112_p12 }
  0x3a   : > { %p2183_p4 = por %p2182_p6, %p2181_p2 }
  0x3b   : > { %p2177_p0 = pneg %p2176_p13 }
  0x3c   : > { %1998 = dma.hbm_to_vmem [thread:$0]  (!%p2513_p11), %s2870_s7, 16, %s453_s28, [#allocation11]  }
  0x3d   : > { %p2184_p10 = pnand %p2183_p4, %p2177_p0 }
  0x3f   : > { %2187 = shalt.err (!%p2184_p10)
}
  0x40   : > { %s2871_s8 = sld [smem:[#allocation29_spill]]  ;;  %s2373_s13 = smov [#allocation13]  }
  0x41   : > { %s480_s25 = sshll.u32 %s2373_s13, 4  ;;  %s481_s25 = int_to_ptr.vmem [resolvable:$true] %s480_s25 }
  0x42   : > { %s2199_s28 = scalar_lea.vmem %s481_s25, 16  ;;  %s2206_s20 = scalar_lea.vmem %s481_s25, 32 }
  0x43   : > { %p2200_p1 = scmp.ne.s32.totalorder %s481_s25, %s2199_s28  ;;  %p2207_p6 = scmp.lt.s32.totalorder %s481_s25, %s481_s25 }
  0x44   : > { %p2208_p5 = scmp.lt.s32.totalorder %s2206_s20, %s2199_s28 }
  0x45   : > { %p2202_p2 = pnand %p2200_p1, %p2112_p12 }
  0x46   : > { %2001 = dma.hbm_to_vmem [thread:$0]  (!%p2513_p11), %s2871_s8, 256, %s465_s22, [#allocation11], %s2848_s24, %s2848_s24, %s2850_s27  }
  0x47   : > { %p2203_p4 = pneg %p2202_p2  ;;  %p2209_p3 = por %p2208_p5, %p2207_p6 }
  0x49   : > { %p2210_p7 = pnand %p2209_p3, %p2203_p4 }
  0x4b   : > { %2213 = shalt.err (!%p2210_p7)
}
  0x4c   : > { %s2872_s9 = sld [smem:[#allocation30_spill]]  ;;  %s54_s22 = sadd.s32 1, %s2362_s17 }
  0x4d   : > { %s117_s11 = sadd.s32 1, %s2354_s15  ;;  %p56_p12 = scmp.ge.s32.totalorder %s54_s22, 2 }
  0x4e   : > { %p124_p9 = scmp.ne.s32.totalorder %s2354_s15, %s2350_s30  ;;  %p125_p13 = scmp.eq.s32.totalorder %s2366_s18, 0 }
  0x4f   : > { %p2020_p0 = scmp.lt.s32.totalorder %s2366_s18, 2  ;;  %s2903_s22 = smov (%p56_p12, %s54_s22), 0 }
  0x50   : > { %2873 = sst [smem:[#allocation24_spill]] %s2903_s22  ;;  %p126_p10 = por %p125_p13, %p124_p9 }
  0x51   : > { %p2874_p1 = scmp.eq.s32.totalorder %s2485_s19, 1  ;;  %s114_s12 = ssub.s32 %s2362_s17, %s2903_s22 }
  0x52   : > { %2004 = dma.hbm_to_vmem [thread:$0]  (!%p2513_p11), %s2872_s9, 16, %s481_s25, [#allocation14]  }
  0x53   : > { %p2567_p2 = por %p2874_p1, %p124_p9  ;;  %s530_s13 = sand.u32 1, %s2354_s15  }
  0x54   : > { %p115_p4 = scmp.eq.s32.totalorder %s114_s12, 0  ;;  %s2574_s25 = sshll.u32 %s530_s13, 4 }
  0x55   : > { %s1843_s28 = sshll.u32 %s2362_s17, 8  ;;  %s2876_s2 = sld [smem:[#allocation25_spill]] }
  0x56   : > { %s2578_s20 = scalar_select %p115_p4, %s2354_s15, %s117_s11  }
  0x57   : > { %s534_s27 = scalar_lea.vmem [#allocation4], %s2574_s25  ;;  %p2586_p11 = pnand %p2020_p0, %p126_p10 }
  0x58   : > { %s541_s4 = sshll.u32 %s534_s27, 4  ;;  %s2878_s3 = sld [smem:[#allocation26_spill]]  ;;  %s542_s4 = int_to_ptr.vmem [resolvable:$true] %s541_s4 }
  0x59   : > { %s531_s11 = scalar_lea.sflag [#allocation5], %s530_s13  ;;  %p2216_p6 = pneg %p2586_p11 }
  0x5a   : > { %s2227_s29 = scalar_lea.vmem %s542_s4, 256  ;;  %s2374_s27 = smov [#allocation4]  }
  0x5b   : > { %s540_s24 = scalar_lea.hbm %s2876_s2, %s1843_s28  ;;  %p2228_p5 = scmp.ne.s32.totalorder %s542_s4, %s2227_s29 }
  0x5c   : > { %s2232_s14 = sshll.u32 %s2374_s27, 4  ;;  %s2233_s14 = int_to_ptr.vmem [resolvable:$false] %s2232_s14 }
  0x5d   : > { %p2230_p3 = pnand %p2228_p5, %p2216_p6  ;;  %s2234_s2 = scalar_lea.vmem %s2233_s14, 512 }
  0x5e   : > { %s2593_s9 = scalar_lea.hbm %s2878_s3, %s1843_s28  ;;  %p2235_p12 = scmp.lt.s32.totalorder %s542_s4, %s2233_s14 }
  0x5f   : > { %p2231_p7 = pneg %p2230_p3  ;;  %p2236_p9 = scmp.lt.s32.totalorder %s2234_s2, %s2227_s29 }
  0x61   : > { %p2237_p13 = por %p2236_p9, %p2235_p12 }
  0x63   : > { %p2238_p0 = pnand %p2237_p13, %p2231_p7 }
  0x65   : > { %2241 = shalt.err (!%p2238_p0)
}
  0x66   : > { %s2879_s8 = smov 4   ;;  %s2880_s13 = smov 64  }
  0x67   : > { %2008 = dma.hbm_to_vmem [thread:$0]  (!%p2586_p11), %s540_s24, 256, %s542_s4, %s531_s11, %s2880_s13, %s2880_s13, %s2879_s8  }
  0x68   : > { %s555_s28 = scalar_lea.vmem [#allocation7], %s2574_s25  ;;  %s551_s3 = sand.u32 1, %s2366_s18  }
  0x69   : > { %s562_s12 = sshll.u32 %s555_s28, 4  ;;  %s552_s27 = scalar_lea.sflag [#allocation8], %s551_s3  ;;  %s563_s12 = int_to_ptr.vmem [resolvable:$true] %s562_s12 }
  0x6a   : > { %s2255_s22 = scalar_lea.vmem %s563_s12, 256  ;;  %s2375_s2 = smov [#allocation7]  }
  0x6b   : > { %p2256_p10 = scmp.ne.s32.totalorder %s563_s12, %s2255_s22  ;;  %s2260_s29 = sshll.u32 %s2375_s2, 4  ;;  %s2261_s29 = int_to_ptr.vmem [resolvable:$false] %s2260_s29 }
  0x6c   : > { %s2262_s14 = scalar_lea.vmem %s2261_s29, 512  ;;  %p2263_p5 = scmp.lt.s32.totalorder %s563_s12, %s2261_s29 }
  0x6d   : > { %p2258_p1 = pnand %p2256_p10, %p2216_p6  ;;  %p2264_p3 = scmp.lt.s32.totalorder %s2262_s14, %s2255_s22 }
  0x6f   : > { %p2259_p4 = pneg %p2258_p1  ;;  %p2265_p7 = por %p2264_p3, %p2263_p5 }
  0x71   : > { %p2266_p12 = pnand %p2265_p7, %p2259_p4 }
  0x73   : > { %2269 = shalt.err (!%p2266_p12)
}
  0x74   : > { %2011 = dma.hbm_to_vmem [thread:$0]  (!%p2586_p11), %s2593_s9, 256, %s563_s12, %s552_s27, %s2880_s13, %s2880_s13, %s2879_s8  }
  0x75   : > { %574 = sbr.rel (%p2504_p8) target bundleno = 2130 (0x852), region = 76  ;;  %s2619_s3 = sand.u32 (!%p2504_p8), 1, %s2350_s30  }
  0x76   : > { %s1802_s4 = sshll.u32 (!%p2504_p8), %s2619_s3, 4  ;;  %s577_s24 = scalar_lea.sflag (!%p2504_p8), [#allocation5], %s2619_s3 }
  0x77   : > { %s2623_s22 = scalar_lea.vmem (!%p2504_p8), [#allocation4], %s1802_s4  ;;  %p2881_p6 = scmp.ne.s32.totalorder (!%p2504_p8), %s2864_s21, 0 }
  0x7a   : > { %2321 = dma.done.wait (%p2881_p6), %s577_s24, 256  }
  0x7b   : > { %2323 = vsyncadd (%p2881_p6), %s577_s24, 4294967040  ;;  %s585_s7 = sand.u32 1, %s2485_s19   ;;  %s2630_s23 = scalar_lea.vmem [#allocation7], %s1802_s4 }
  0x7c   : > { %s586_s9 = scalar_lea.sflag [#allocation8], %s585_s7 }
  0x7d   : > { %2325 = dma.done.wait (%p2881_p6), %s586_s9, 256  }
  0x7e   : > { %2327 = vsyncadd (%p2881_p6), %s586_s9, 4294967040  ;;  %p2882_p8 = scmp.eq.s32.totalorder %s2485_s19, 0 }
  0x80   : > { %2329 = dma.done.wait (%p2882_p8), [#allocation8], 256   ;;  %p2883_p11 = pmov %p2882_p8 }
  0x81   : > { %p2884_p9 = pmov %p2882_p8 }
  0x82   : > { %2331 = vsyncadd (%p2883_p11), [#allocation8], 4294967040 }
  0x83   : > { %2333 = dma.done.wait (%p2884_p9), [#allocation11], 272   ;;  %p2885_p13 = pmov %p2882_p8 }
  0x84   : > { %p2886_p0 = pmov %p2882_p8 }
  0x85   : > { %2335 = vsyncadd (%p2885_p13), [#allocation11], 4294967024 }
  0x86   : > { %2337 = dma.done.wait (%p2886_p0), [#allocation14], 16   ;;  %p2887_p10 = pmov %p2886_p0 }
  0x87   : > { %p675_p1 = scmp.lt.s32.totalorder %s2358_s16, 1  ;;  %v2376_v0 = vmov 0.0   ;;  %vm2377_vm0 = vmmov 0   ;;  %vm713_vm1 = vcmask 64512   ;;  %v705_v1 = vld [vmem:[%s2623_s22] sm:$0xf] }
  0x88   : > { %2339 = vsyncadd (%p2887_p10), [#allocation14], 4294967280  ;;  %1878 = vmatprep.subr.bf16.mxu0 %v2376_v0  ;;  %1884 = vmatprep.subr.bf16.mxu1 %v2376_v0  ;;  %v706_v2 = vld [vmem:[%s2623_s22 + $0x4] sm:$0xf]  ;;  %v718_v3 = vsel %vm713_vm1, %v705_v1, 0  ;;  %vm949_vm2 = vcmask 1043456  }
  0x89   : > { %1880 = vmatprep.mubr.msk.bf16.mxu0 %vm2377_vm0, %v2376_v0  ;;  %1886 = vmatprep.mubr.msk.bf16.mxu1 %vm2377_vm0, %v2376_v0  ;;  %s2656_s19 = scalar_select %p675_p1, %s2358_s16, 1  ;;  %v764_v4 = vsel %vm713_vm1, %v706_v2, 0  ;;  %v707_v5 = vld [vmem:[%s2623_s22 + $0x8] sm:$0xf]  ;;  %v708_v6 = vld [vmem:[%s2623_s22 + $0xc] sm:$0xf] }
  0x8a   : > { %1879 = vmatpush3.bf16.xpose.msra.mxu0 %v718_v3  ;;  %1885 = vmatpush3.bf16.xpose.msra.mxu1 %v764_v4  ;;  %v810_v9 = vsel %vm713_vm1, %v707_v5, 0  ;;  %v856_v10 = vsel %vm713_vm1, %v708_v6, 0  ;;  %v709_v53 = vld [vmem:[%s2630_s23] sm:$0xf]  ;;  %v710_v54 = vld [vmem:[%s2630_s23 + $0x4] sm:$0xf] }
  0x8b   : > { %s1845_s21 = sshll.u32 %s2656_s19, 4  ;;  %1890 = vmatprep.subr.bf16.mxu0 %v2376_v0  ;;  %1896 = vmatprep.subr.bf16.mxu1 %v2376_v0  ;;  %v951_v55 = vsel %vm949_vm2, %v709_v53, 0  ;;  %v997_v56 = vsel %vm949_vm2, %v710_v54, 0  ;;  %v711_v62 = vld [vmem:[%s2630_s23 + $0x8] sm:$0xf]  ;;  %vm1323_vm3 = vcmask 261120  }
  0x8c   : > { %s689_s8 = scalar_lea.vmem %s2829_s1, %s1845_s21  ;;  %v1043_v2 = vsel %vm949_vm2, %v711_v62, 0  ;;  %v712_v4 = vld [vmem:[%s2630_s23 + $0xc] sm:$0xf]  ;;  %1372 = vst.msk [vmem:[#allocation3] sm:$0xff] %vm1323_vm3, %v2376_v0  ;;  %s1809_s13 = sshll.u32 %s2656_s19, 3  ;;  %vm1485_vm4 = vcmask 523264  }
  0x8d   : > { %v701_v7 = vld [vmem:[%s689_s8] sm:$0xf]  ;;  %v702_v8 = vld [vmem:[%s689_s8 + $0x4] sm:$0xf]  ;;  %v703_v11 = vld [vmem:[%s689_s8 + $0x8] sm:$0xf]  ;;  %s681_s27 = scalar_lea.vmem %s2828_s0, %s1809_s13 }
  0x8e   : > { %v704_v12 = vld [vmem:[%s689_s8 + $0xc] sm:$0xf]  ;;  %s2888_s13 = sld [smem:[#allocation31_spill]]  ;;  %s1808_s28 = sshll.u32 %s2619_s3, 3 }
  0x8f   : > { %s2889_s2 = sld [smem:[#allocation32_spill]]  ;;  %s1840_s24 = sshll.u32 %s2358_s16, 7 }
  0x90   : > { %s2890_s4 = sld [smem:[#allocation33_spill]]  ;;  %s674_s22 = scalar_lea.vmem [#allocation15], %s1808_s28 }
  0x91   : > { %1881 = vmatmul.mubr.msk.bf16.vlgmr.msra.gmra.mxu0 %vm713_vm1, %v701_v7  ;;  %1887 = vmatmul.mubr.msk.bf16.vlgmr.msra.gmra.mxu1 %vm713_vm1, %v702_v8  ;;  %v1089_v7 = vsel %vm949_vm2, %v712_v4, 0  ;;  %s1591_s7 = sshll.u32 %s674_s22, 4  ;;  %s2891_s19 = sld [smem:[#allocation34_spill]]  ;;  %s1592_s7 = int_to_ptr.vmem [resolvable:$true] %s1591_s7 }
  0x92   : > { %1891 = vmatpush3.bf16.xpose.msra.mxu0 %v810_v9  ;;  %1897 = vmatpush3.bf16.xpose.msra.mxu1 %v856_v10  ;;  %v1135_v9 = vld [vmem:[#allocation9] sm:$0xf]  ;;  %s1577_s25 = scalar_lea.sflag [#allocation6], %s2619_s3  ;;  %s2270_s11 = scalar_lea.vmem %s1592_s7, 128 }
  0x93   : > { %1892 = vmatprep.mubr.msk.bf16.mxu0 %vm2377_vm0, %v2376_v0  ;;  %1898 = vmatprep.mubr.msk.bf16.mxu1 %vm2377_vm0, %v2376_v0  ;;  %p2271_p4 = scmp.ne.s32.totalorder %s1592_s7, %s2270_s11  ;;  %s2378_s8 = smov [#allocation15]  }
  0x94   : > { %1902 = vmatprep.subr.bf16.mxu0 %v2376_v0  ;;  %1908 = vmatprep.subr.bf16.mxu1 %v2376_v0 }
  0x95   : > { %p2272_p5 = pnand %p2271_p4, %p2567_p2 }
  0x97   : > { %s1589_s21 = scalar_lea.hbm %s2891_s19, %s1840_s24  ;;  %p2273_p3 = pneg %p2272_p5 }
  0x99   : > { %1893 = vmatmul.mubr.msk.bf16.vlgmr.msra.gmra.mxu0 %vm713_vm1, %v703_v11  ;;  %1899 = vmatmul.mubr.msk.bf16.vlgmr.msra.gmra.mxu1 %vm713_vm1, %v704_v12  ;;  %v1143_v12 = vsel %vm949_vm2, %v1135_v9, 0 }
  0x9a   : > { %1904 = vmatprep.mubr.msk.bf16.mxu0 %vm2377_vm0, %v2376_v0  ;;  %1910 = vmatprep.mubr.msk.bf16.mxu1 %vm2377_vm0, %v2376_v0 }
  0x9b   : > { %1903 = vmatpush3.bf16.msra.mxu0 %v951_v55  ;;  %1909 = vmatpush3.bf16.msra.mxu1 %v997_v56 }
  0x9c   : > { %1914 = vmatprep.subr.bf16.mxu0 %v2376_v0  ;;  %1920 = vmatprep.subr.bf16.mxu1 %v2376_v0 }
 0x151   : > { %v754_v13 = vpop.f32.mrf.mxu0  ;;  %v800_v14 = vpop.f32.mrf.mxu1 }
 0x152   : > { %v898_v15 = vsel %vm713_vm1, %v754_v13, -inf  ;;  %v901_v18 = vsel %vm713_vm1, %v800_v14, -inf }
 0x153   : > { %v1888_v16 = vpop.f32.mrf.mxu1  ;;  %899 = vmax.xlane.f32.xlu0 %v898_v15  ;;  %v1882_v17 = vpop.f32.mrf.mxu0 }
 0x154   : > { %v1136_v16 = vld [vmem:[#allocation9 + $0x4] sm:$0xf] }
 0x155   : > { %v757_v19 = vpop.f32.mrf.mxu0  ;;  %v803_v20 = vpop.f32.mrf.mxu1  ;;  %v1189_v17 = vsel %vm949_vm2, %v1136_v16, 0 }
 0x157   : > { %v1889_v21 = vpop.f32.mrf.mxu1  ;;  %902 = vmax.xlane.f32.xlu0 %v901_v18  ;;  %v1883_v22 = vpop.f32.mrf.mxu0  ;;  %v1137_v18 = vld [vmem:[#allocation9 + $0x8] sm:$0xf] }
 0x158   : > { %v1235_v21 = vsel %vm949_vm2, %v1137_v18, 0  ;;  %v1825_v18 = vld [vmem:[%s2834_s6] ss:$0 sm:$0xff] }
 0x159   : > { %v846_v23 = vpop.f32.mrf.mxu0  ;;  %v892_v24 = vpop.f32.mrf.mxu1 }
 0x15a   : > { %v904_v25 = vsel %vm713_vm1, %v846_v23, -inf  ;;  %v907_v28 = vsel %vm713_vm1, %v892_v24, -inf }
 0x15b   : > { %v1900_v26 = vpop.f32.mrf.mxu1  ;;  %905 = vmax.xlane.f32.xlu1 %v904_v25  ;;  %v1894_v27 = vpop.f32.mrf.mxu0 }
 0x15d   : > { %v849_v29 = vpop.f32.mrf.mxu0  ;;  %v895_v30 = vpop.f32.mrf.mxu1 }
 0x15f   : > { %v1901_v31 = vpop.f32.mrf.mxu1  ;;  %908 = vmax.xlane.f32.xlu1 %v907_v28  ;;  %v1895_v32 = vpop.f32.mrf.mxu0 }
 0x1dc   : > { %v900_v33 = vpop.xlane.xlu0 %899 }
 0x1dd   : > { %v910_v34 = vsub.f32 %v754_v13, %v900_v33 }
 0x1df   : > { %v914_v35 = vmul.f32 1.442695, %v910_v34 }
 0x1e0   : > { %v903_v36 = vpop.xlane.xlu0 %902 }
 0x1e1   : > { %2088 = vpow2.f32 %v914_v35  ;;  %v911_v37 = vsub.f32 %v800_v14, %v903_v36 }
 0x1e3   : > { %v916_v38 = vmul.f32 1.442695, %v911_v37 }
 0x1e4   : > { %v906_v39 = vpop.xlane.xlu1 %905 }
 0x1e5   : > { %2090 = vpow2.f32 %v916_v38  ;;  %v912_v40 = vsub.f32 %v846_v23, %v906_v39  ;;  %v1138_v23 = vld [vmem:[#allocation9 + $0xc] sm:$0xf] }
 0x1e6   : > { %v1281_v27 = vsel %vm949_vm2, %v1138_v23, 0 }
 0x1e7   : > { %v918_v41 = vmul.f32 1.442695, %v912_v40 }
 0x1e8   : > { %v909_v42 = vpop.xlane.xlu1 %908 }
 0x1e9   : > { %2092 = vpow2.f32 %v918_v41  ;;  %v913_v43 = vsub.f32 %v892_v24, %v909_v42 }
 0x1eb   : > { %v920_v44 = vmul.f32 1.442695, %v913_v43 }
 0x1ed   : > { %2094 = vpow2.f32 %v920_v44 }
 0x1ee   : > { %v2089_v45 = vpop.eup %2088 }
 0x1ef   : > { %v922_v46 = vsel %vm713_vm1, %v2089_v45, 0.0 }
 0x1f0   : > { %923 = vadd.xlane.f32.xlu0 %v922_v46 }
 0x1f2   : > { %v2091_v47 = vpop.eup %2090 }
 0x1f3   : > { %v925_v48 = vsel %vm713_vm1, %v2091_v47, 0.0 }
 0x1f4   : > { %926 = vadd.xlane.f32.xlu1 %v925_v48 }
 0x1f6   : > { %v2093_v49 = vpop.eup %2092 }
 0x1f7   : > { %v928_v50 = vsel %vm713_vm1, %v2093_v49, 0.0 }
 0x1f8   : > { %929 = vadd.xlane.f32.xlu0 %v928_v50 }
 0x1fa   : > { %v2095_v51 = vpop.eup %2094 }
 0x1fb   : > { %v931_v52 = vsel %vm713_vm1, %v2095_v51, 0.0 }
 0x1fc   : > { %932 = vadd.xlane.f32.xlu1 %v931_v52 }
 0x279   : > { %v924_v57 = vpop.xlane.xlu0 %923 }
 0x27a   : > { %2096 = vrcp.f32 %v924_v57 }
 0x27d   : > { %v927_v58 = vpop.xlane.xlu1 %926 }
 0x27e   : > { %2098 = vrcp.f32 %v927_v58 }
 0x281   : > { %v930_v59 = vpop.xlane.xlu0 %929 }
 0x282   : > { %2100 = vrcp.f32 %v930_v59 }
 0x285   : > { %v933_v60 = vpop.xlane.xlu1 %932 }
 0x286   : > { %2102 = vrcp.f32 %v933_v60  ;;  %v1824_v60 = vld [vmem:[%s2833_s5] ss:$0 sm:$0xff] }
 0x287   : > { %v2097_v61 = vpop.eup %2096 }
 0x288   : > { %v938_v63 = vmul.f32 %v2097_v61, %v2089_v45 }
 0x28a   : > { %v942_v1 = vpack.c.bf16 %v938_v63, %v938_v63 }
 0x28b   : > { %v2099_v3 = vpop.eup %2098 }
 0x28c   : > { %1905 = vmatmul.mubr.msk.bf16.vlgmr.msra.gmra.mxu0 %vm713_vm1, %v942_v1  ;;  %v939_v5 = vmul.f32 %v2099_v3, %v2091_v47  ;;  %v1339_v1 = vld [vmem:[%s681_s27] sm:$0xff] }
 0x28d   : > { %1915 = vmatpush3.bf16.msra.mxu0 %v1043_v2  ;;  %1916 = vmatprep.mubr.msk.bf16.mxu0 %vm2377_vm0, %v2376_v0 }
 0x28e   : > { %v943_v6 = vpack.c.bf16 %v939_v5, %v939_v5  ;;  %1926 = vmatprep.subr.bf16.mxu0 %v2376_v0 }
 0x28f   : > { %v2101_v8 = vpop.eup %2100 }
 0x290   : > { %1911 = vmatmul.mubr.msk.bf16.vlgmr.msra.gmra.mxu1 %vm713_vm1, %v943_v6  ;;  %v940_v10 = vmul.f32 %v2101_v8, %v2093_v49 }
 0x291   : > { %1921 = vmatpush3.bf16.msra.mxu1 %v1089_v7  ;;  %1922 = vmatprep.mubr.msk.bf16.mxu1 %vm2377_vm0, %v2376_v0 }
 0x292   : > { %v944_v11 = vpack.c.bf16 %v940_v10, %v940_v10  ;;  %1932 = vmatprep.subr.bf16.mxu1 %v2376_v0 }
 0x293   : > { %v2103_v13 = vpop.eup %2102 }
 0x294   : > { %1917 = vmatmul.mubr.msk.bf16.vlgmr.msra.gmra.mxu0 %vm713_vm1, %v944_v11  ;;  %v941_v14 = vmul.f32 %v2103_v13, %v2095_v51  ;;  %v2083_v13 = vld [vmem:[#allocation12] sm:$0xff]  }
 0x295   : > { %1927 = vmatpush3.bf16.msra.mxu0 %v1143_v12  ;;  %1928 = vmatprep.mubr.msk.bf16.mxu0 %vm2377_vm0, %v2376_v0  ;;  %v2082_v12 = vld [vmem:[#allocation12 + $0x8] sm:$0xff]  }
 0x296   : > { %v945_v15 = vpack.c.bf16 %v941_v14, %v941_v14  ;;  %1938 = vmatprep.subr.bf16.mxu0 %v2376_v0 }
 0x298   : > { %1923 = vmatmul.mubr.msk.bf16.vlgmr.msra.gmra.mxu1 %vm713_vm1, %v945_v15 }
 0x299   : > { %1934 = vmatprep.mubr.msk.bf16.mxu1 %vm2377_vm0, %v2376_v0  ;;  %1933 = vmatpush3.bf16.msra.mxu1 %v1189_v17 }
 0x29a   : > { %1944 = vmatprep.subr.bf16.mxu1 %v2376_v0 }
 0x34c   : > { %v987_v19 = vpop.f32.mrf.mxu0 }
 0x34d   : > { %v1131_v20 = vpack.c.bf16 %v987_v19, %v987_v19 }
 0x34e   : > { %v1906_v22 = vpop.f32.mrf.mxu0 }
 0x34f   : > { %1929 = vmatmul.mubr.msk.bf16.vlgmr.msra.gmra.mxu0 %vm713_vm1, %v1131_v20  ;;  %v1826_v20 = vld [vmem:[#allocation10] ss:$0 sm:$0xff] }
 0x350   : > { %v990_v24 = vpop.f32.mrf.mxu0  ;;  %v1033_v25 = vpop.f32.mrf.mxu1  ;;  %1939 = vmatpush3.bf16.msra.mxu0 %v1235_v21  ;;  %1940 = vmatprep.mubr.msk.bf16.mxu0 %vm2377_vm0, %v2376_v0 }
 0x351   : > { %v1132_v26 = vpack.c.bf16 %v1033_v25, %v1033_v25  ;;  %1950 = vmatprep.subr.bf16.mxu0 %v2376_v0  ;;  %v2084_v25 = vld [vmem:[%s2838_s10 + $0x18] sm:$0xff]  }
 0x352   : > { %v1907_v28 = vpop.f32.mrf.mxu0  ;;  %v1912_v29 = vpop.f32.mrf.mxu1 }
 0x353   : > { %1935 = vmatmul.mubr.msk.bf16.vlgmr.msra.gmra.mxu1 %vm713_vm1, %v1132_v26  ;;  %v2085_v26 = vld [vmem:[%s2838_s10 + $0x10] sm:$0xff]   ;;  %v2087_v28 = vld [vmem:[%s2838_s10] sm:$0xff]  }
 0x354   : > { %v1036_v30 = vpop.f32.mrf.mxu1  ;;  %v1079_v31 = vpop.f32.mrf.mxu0  ;;  %1945 = vmatpush3.bf16.msra.mxu1 %v1281_v27  ;;  %1946 = vmatprep.mubr.msk.bf16.mxu1 %vm2377_vm0, %v2376_v0  ;;  %v2086_v27 = vld [vmem:[%s2838_s10 + $0x8] sm:$0xff]   ;;  %v1827_v29 = vld [vmem:[#allocation13] ss:$0 sm:$0xff] }
 0x355   : > { %v1133_v32 = vpack.c.bf16 %v1079_v31, %v1079_v31  ;;  %1958 = vmatprep.subr.bf16.mxu1 %v2376_v0 }
 0x356   : > { %v1913_v33 = vpop.f32.mrf.mxu1  ;;  %v1918_v34 = vpop.f32.mrf.mxu0 }
 0x357   : > { %1941 = vmatmul.mubr.msk.bf16.vlgmr.msra.gmra.mxu0 %vm713_vm1, %v1133_v32 }
 0x358   : > { %v1082_v35 = vpop.f32.mrf.mxu0  ;;  %v1125_v36 = vpop.f32.mrf.mxu1  ;;  %1954 = vmatprep.mubr.msk.bf16.mxu0 %vm2377_vm0, %v2376_v0  ;;  %1951 = vmatpush3.bf16.msra.mxu0 %v2082_v12 }
 0x359   : > { %v1134_v37 = vpack.c.bf16 %v1125_v36, %v1125_v36  ;;  %1952 = vmatprep.subr.bf16.mxu0 %v2376_v0 }
 0x35a   : > { %v1919_v38 = vpop.f32.mrf.mxu0  ;;  %v1924_v39 = vpop.f32.mrf.mxu1 }
 0x35b   : > { %1947 = vmatmul.mubr.msk.bf16.vlgmr.msra.gmra.mxu1 %vm713_vm1, %v1134_v37 }
 0x35c   : > { %v1128_v40 = vpop.f32.mrf.mxu1  ;;  %1966 = vmatprep.mubr.msk.bf16.mxu1 %vm2377_vm0, %v2376_v0  ;;  %1953 = vmatpush3.bf16.msra.mxu0 %v2083_v13 }
 0x35d   : > { %1959 = vmatpush3.bf16.msra.mxu1 %v2084_v25 }
 0x35e   : > { %v1925_v41 = vpop.f32.mrf.mxu1  ;;  %1960 = vmatprep.subr.bf16.mxu1 %v2376_v0 }
 0x361   : > { %1961 = vmatpush3.bf16.msra.mxu1 %v2085_v26 }
 0x362   : > { %1962 = vmatprep.subr.bf16.mxu1 %v2376_v0 }
 0x365   : > { %1963 = vmatpush3.bf16.msra.mxu1 %v2086_v27 }
 0x366   : > { %1964 = vmatprep.subr.bf16.mxu1 %v2376_v0 }
 0x369   : > { %1965 = vmatpush3.bf16.msra.mxu1 %v2087_v28 }
 0x40f   : > { %v1179_v42 = vpop.f32.mrf.mxu0 }
 0x410   : > { %v1324_v51 = vsel %vm1323_vm3, %v1179_v42, 0.0 }
 0x411   : > { %v1930_v43 = vpop.f32.mrf.mxu0 }
 0x413   : > { %v1182_v44 = vpop.f32.mrf.mxu0  ;;  %v1225_v45 = vpop.f32.mrf.mxu1 }
 0x414   : > { %v1325_v48 = vsel %vm1323_vm3, %v1225_v45, 0.0  ;;  %v1451_v44 = vld [vmem:[#allocation3] sm:$0xff] }
 0x415   : > { %v1931_v46 = vpop.f32.mrf.mxu0  ;;  %v1936_v47 = vpop.f32.mrf.mxu1  ;;  %v1326_v53 = vadd.f32 %v1325_v48, %v1324_v51 }
 0x417   : > { %v1228_v49 = vpop.f32.mrf.mxu1  ;;  %v1271_v50 = vpop.f32.mrf.mxu0 }
 0x418   : > { %v1327_v52 = vsel %vm1323_vm3, %v1271_v50, 0.0  ;;  %v1836_v50 = vld [vmem:[%s2888_s13] ss:$0 sm:$0xff]  ;;  %s2274_s13 = sshll.u32 %s2378_s8, 4  ;;  %s2275_s13 = int_to_ptr.vmem [resolvable:$false] %s2274_s13 }
 0x419   : > { %v1937_v54 = vpop.f32.mrf.mxu1  ;;  %v1942_v55 = vpop.f32.mrf.mxu0  ;;  %v1328_v56 = vadd.f32 %v1327_v52, %v1326_v53  ;;  %s2276_s16 = scalar_lea.vmem %s2275_s13, 256  ;;  %p2277_p7 = scmp.lt.s32.totalorder %s1592_s7, %s2275_s13 }
 0x41a   : > { %p2278_p12 = scmp.lt.s32.totalorder %s2276_s16, %s2270_s11 }
 0x41b   : > { %v1274_v57 = vpop.f32.mrf.mxu0  ;;  %v1317_v58 = vpop.f32.mrf.mxu1 }
 0x41c   : > { %v1329_v59 = vsel %vm1323_vm3, %v1317_v58, 0.0  ;;  %p2279_p6 = por %p2278_p12, %p2277_p7 }
 0x41d   : > { %v1330_v61 = vadd.f32 %v1329_v59, %v1328_v56  ;;  %v1943_v62 = vpop.f32.mrf.mxu0  ;;  %v1948_v63 = vpop.f32.mrf.mxu1 }
 0x41e   : > { %p2280_p8 = pnand %p2279_p6, %p2273_p3 }
 0x41f   : > { %v1338_v2 = vadd.f32 %v1824_v60, %v1330_v61  ;;  %v1320_v3 = vpop.f32.mrf.mxu1 }
 0x420   : > { %v1838_v3 = vld [vmem:[%s2890_s4] ss:$0 sm:$0xff] }
 0x421   : > { %v1949_v4 = vpop.f32.mrf.mxu1  ;;  %v1340_v5 = vadd.f32 %v1339_v1, %v1338_v2  ;;  %v1837_v1 = vld [vmem:[%s2889_s2] ss:$0 sm:$0xff] }
 0x423   : > { %v1343_v6 = vsel %vm1323_vm3, %v1340_v5, 0.0 }
 0x424   : > { %1344 = vadd.xlane.f32.xlu0 %v1343_v6 }
 0x4ad   : > { %v1345_v7 = vpop.xlane.xlu0 %1344 }
 0x4ae   : > { %v1347_v8 = vmul.f32 0.03125, %v1345_v7 }
 0x4b0   : > { %v1348_v9 = vsub.f32 %v1340_v5, %v1347_v8 }
 0x4b2   : > { %v1349_v10 = vmul.f32 %v1348_v9, %v1348_v9 }
 0x4b4   : > { %v1350_v11 = vsel %vm1323_vm3, %v1349_v10, 0.0 }
 0x4b5   : > { %1351 = vadd.xlane.f32.xlu1 %v1350_v11 }
 0x53e   : > { %v1352_v14 = vpop.xlane.xlu1 %1351 }
 0x53f   : > { %v1353_v15 = vmul.f32 0.03125, %v1352_v14 }
 0x541   : > { %v1354_v16 = vadd.f32 1e-12, %v1353_v15 }
 0x543   : > { %2104 = vrsqrt.f32 %v1354_v16 }
 0x550   : > { %v2105_v17 = vpop.eup %2104 }
 0x551   : > { %v1356_v19 = vmul.f32 %v2105_v17, %v1348_v9 }
 0x553   : > { %v1363_v21 = vmul.f32 %v1825_v18, %v1356_v19 }
 0x555   : > { %v1370_v22 = vadd.f32 %v1826_v20, %v1363_v21 }
 0x557   : > { %1371 = vst.msk [vmem:[#allocation2] sm:$0xff] %vm1323_vm3, %v1370_v22 }
 0x55e   : > { %v1373_v23 = vld [vmem:[#allocation2] sm:$0xff] }
 0x55f   : > { %v1374_v24 = vpack.c.bf16 %v1373_v23, %v1373_v23 }
 0x561   : > { %1955 = vmatmul.mubr.msk.bf16.vlgmr.msra.gmra.mxu0 %vm1323_vm3, %v1374_v24 }
 0x621   : > { %v1436_v30 = vpop.f32.mrf.mxu0 }
 0x622   : > { %v1437_v31 = vadd.f32 %v1827_v29, %v1436_v30 }
 0x623   : > { %v1956_v32 = vpop.f32.mrf.mxu0 }
 0x624   : > { %v1443_v33 = vmul.f32 %v1437_v31, %v1437_v31  ;;  %v1442_v41 = vmul.f32 0.5, %v1437_v31 }
 0x625   : > { %v1439_v34 = vpop.f32.mrf.mxu0 }
 0x626   : > { %v1444_v35 = vmul.f32 %v1443_v33, %v1437_v31 }
 0x627   : > { %v1957_v36 = vpop.f32.mrf.mxu0 }
 0x628   : > { %v1445_v37 = vmul.f32 0.044715, %v1444_v35 }
 0x62a   : > { %v1446_v38 = vadd.f32 %v1445_v37, %v1437_v31 }
 0x62c   : > { %v1447_v39 = vmul.f32 0.7978846, %v1446_v38 }
 0x62e   : > { %2106 = vtanh.f32 %v1447_v39 }
 0x63b   : > { %v2107_v40 = vpop.eup %2106 }
 0x63c   : > { %v1449_v0 = vadd.f32 1.0, %v2107_v40 }
 0x63e   : > { %v1450_v42 = vmul.f32 %v1449_v0, %v1442_v41 }
 0x640   : > { %v1452_v43 = vpack.c.bf16 %v1450_v42, %v1450_v42 }
 0x642   : > { %1967 = vmatmul.mubr.msk.bf16.vlgmr.msra.gmra.mxu1 %vm1485_vm4, %v1452_v43 }
 0x702   : > { %v1523_v45 = vpop.f32.mrf.mxu1 }
 0x703   : > { %v1529_v46 = vadd.f32 %v1523_v45, %v1451_v44 }
 0x704   : > { %v1968_v47 = vpop.f32.mrf.mxu1 }
 0x705   : > { %1530 = vst.msk [vmem:[#allocation3] sm:$0xff] %vm1323_vm3, %v1529_v46 }
 0x706   : > { %v1526_v48 = vpop.f32.mrf.mxu1 }
 0x708   : > { %v1969_v49 = vpop.f32.mrf.mxu1 }
 0x70c   : > { %v1534_v51 = vld [vmem:[#allocation3] sm:$0xff] }
 0x70d   : > { %v1542_v52 = vadd.f32 %v1836_v50, %v1534_v51 }
 0x70f   : > { %v1544_v53 = vadd.f32 %v1542_v52, %v1373_v23 }
 0x711   : > { %v1547_v54 = vsel %vm1323_vm3, %v1544_v53, 0.0 }
 0x712   : > { %1548 = vadd.xlane.f32.xlu0 %v1547_v54 }
 0x79b   : > { %v1549_v55 = vpop.xlane.xlu0 %1548 }
 0x79c   : > { %v1551_v56 = vmul.f32 0.03125, %v1549_v55 }
 0x79e   : > { %v1552_v57 = vsub.f32 %v1544_v53, %v1551_v56 }
 0x7a0   : > { %v1553_v58 = vmul.f32 %v1552_v57, %v1552_v57 }
 0x7a2   : > { %v1554_v59 = vsel %vm1323_vm3, %v1553_v58, 0.0 }
 0x7a3   : > { %1555 = vadd.xlane.f32.xlu1 %v1554_v59 }
 0x82c   : > { %v1556_v60 = vpop.xlane.xlu1 %1555 }
 0x82d   : > { %v1557_v61 = vmul.f32 0.03125, %v1556_v60 }
 0x82f   : > { %v1558_v62 = vadd.f32 1e-12, %v1557_v61 }
 0x831   : > { %2108 = vrsqrt.f32 %v1558_v62 }
 0x83e   : > { %v2109_v63 = vpop.eup %2108 }
 0x83f   : > { %v1560_v2 = vmul.f32 %v2109_v63, %v1552_v57 }
 0x841   : > { %v1567_v4 = vmul.f32 %v1837_v1, %v1560_v2 }
 0x843   : > { %v1574_v5 = vadd.f32 %v1838_v3, %v1567_v4 }
 0x845   : > { %1575 = vst.msk [vmem:[%s674_s22] sm:$0xff] %vm1323_vm3, %v1574_v5 }
 0x846   : > { %2283 = shalt.err (!%p2280_p8)
}
 0x847   : > { %s2284_s28 = scalar_lea.hbm %s1589_s21, 128  ;;  %s2288_s27 = scalar_lea.hbm %s2891_s19, 256 }
 0x848   : > { %p2285_p11 = scmp.ne.s32.totalorder %s1589_s21, %s2284_s28  ;;  %p2289_p0 = scmp.lt.s32.totalorder %s1589_s21, %s2891_s19 }
 0x849   : > { %p2290_p10 = scmp.lt.s32.totalorder %s2288_s27, %s2284_s28 }
 0x84a   : > { %p2286_p9 = pnand %p2285_p11, %p2567_p2 }
 0x84b   : > { %p2291_p1 = por %p2290_p10, %p2289_p0 }
 0x84c   : > { %p2287_p13 = pneg %p2286_p9 }
 0x84e   : > { %p2292_p4 = pnand %p2291_p1, %p2287_p13 }
 0x850   : > { %2295 = shalt.err (!%p2292_p4)
}
 0x851   : > { %1990 = dma.vmem_to_hbm [thread:$0]  (%p2567_p2), %s1592_s7, 128, %s1589_s21, %s1577_s25  }
 0x852 PF: > { %s2892_s14 = sld [smem:[#allocation22_spill]]  ;;  %p2895_p3 = scmp.ge.s32.totalorder %s2366_s18, 2 }
 0x853   : > { %s2893_s4 = sld [smem:[#allocation23_spill]] }
 0x858   : > { %s1603_s24 = sand.u32 1, %s2892_s14  }
 0x859   : > { %p2894_p5 = scmp.ne.s32.totalorder %s2893_s4, 0  ;;  %s1604_s22 = scalar_lea.sflag [#allocation6], %s1603_s24 }
 0x85b   : > { %p2013_p7 = pnand %p2895_p3, %p2894_p5 }
 0x85d   : > { %p2014_p12 = pneg %p2013_p7 }
 0x85f   : > { %2341 = dma.done.wait (%p2014_p12), %s1604_s22, 128  }
 0x860   : > { %2343 = vsyncadd (%p2014_p12), %s1604_s22, 4294967168  ;;  %s35_s18 = sadd.s32 1, %s2366_s18   ;;  %s2896_s26 = sld [smem:[#allocation24_spill]] }
 0x861   : > { %p32_p6 = scmp.ge.s32.totalorder %s35_s18, 4   ;;  %s2897_s29 = smov %s2350_s30 }
 0x862   : > { %s2898_s30 = smov %s2354_s15  ;;  %s2899_s15 = smov %s2578_s20 }
 0x863   : > { %s2900_s16 = smov %s2362_s17  ;;  %34 = sbr.rel (!%p32_p6) target bundleno = 21 (0x15), region = 169 }
 0x866   : > { %s2901_s17 = smov %s2896_s26 }
 0x868   :  { %1609 = vsyncpa [#allocation5], 1 }
 0x869   :  { %1611 = vsyncpa [#allocation5 + $0x1], 1 }
 0x86a   :  { %1612 = vsyncpa [#allocation8], 1 }
 0x86b   :  { %1614 = vsyncpa [#allocation8 + $0x1], 1 }
 0x86c   :  { %1615 = vsyncpa [#allocation11], 1 }
 0x86d   :  { %1616 = vsyncpa [#allocation14], 1 }
 0x86e   :  { %1617 = vsyncpa [#allocation6], 1 }
 0x86f   :  { %1619 = vsyncpa [#allocation6 + $0x1], 1 }

</bundles_post_ra>
